<compile_context>
chip_gen: v7x
topology: tpu7x:2x2x1
jax: 0.10.0
libtpu: 0.0.40
codegen_flags: <defaults>
</compile_context>

<pallas_src>
import functools
import math

import jax
import jax.numpy as jnp
from jax.experimental import pallas as pl
from jax.experimental.pallas import tpu as pltpu


# ------------- pass 1: pooled = relu(x @ Wp^T + bp), pooled_mu = pooled**mu -------------

def _pool_kernel(x_ref, wp_ref, bp_ref, pooled_ref, pmu_ref, *, mu):
    # bf16 MXU operands, f32 accumulation; bias + relu on the VPU.
    pooled = jnp.dot(x_ref[...].astype(jnp.bfloat16), wp_ref[...],
                     preferred_element_type=jnp.float32) + bp_ref[...]
    pooled = jnp.maximum(pooled, 0.0)
    if mu == 2.0:
        pmu = pooled * pooled                       # one VPU mul, no exp(log(x)) pow chain
    else:
        pmu = pooled ** mu
    pooled_ref[...] = pooled.astype(pooled_ref.dtype)   # bf16 writeback
    pmu_ref[...] = pmu.astype(pmu_ref.dtype)            # bf16


# ---- pass 2: acc = mask @ pooled_mu ; agg = (inv_deg*acc)**(1/mu) ; fused projection ----

def _agg_proj_kernel(adj_ref, pmu_ref, pooled_ref, invdeg_ref, w1_ref, w2_ref,
                     b12_ref, o_ref, acc_ref, *, mu):
    k = pl.program_id(1)
    tk = adj_ref.shape[1]

    @pl.when(k == 0)
    def _():
        acc_ref[...] = jnp.zeros_like(acc_ref)

    # acc[i] += mask[i, k] @ pooled_mu[k]   (int8 mask upcast to bf16 in-kernel, f32 accum)
    start = pl.multiple_of(k * tk, tk)
    pmu_tile = pmu_ref[pl.ds(start, tk), :]              # pooled**mu is VMEM-resident
    acc_ref[...] += jnp.dot(adj_ref[...].astype(jnp.bfloat16), pmu_tile,
                            preferred_element_type=jnp.float32)

    @pl.when(k == pl.num_programs(1) - 1)
    def _():
        acc = acc_ref[...] * invdeg_ref[...]             # exact f32 row normalization
        if mu == 2.0:
            agg = jnp.sqrt(jnp.maximum(acc, 0.0))        # EUP sqrt
        else:
            safe = jnp.maximum(acc, 1e-30)               # NaN-safe fractional pow at 0
            agg = jnp.where(acc > 0.0, safe ** (1.0 / mu), 0.0)
        # Fused projection: two bf16 MXU dots (no lane concat / relayout), lane-padded out.
        out = (jnp.dot(pooled_ref[...], w1_ref[...], preferred_element_type=jnp.float32)
               + jnp.dot(agg.astype(jnp.bfloat16), w2_ref[...],
                         preferred_element_type=jnp.float32)
               + b12_ref[...])
        o_ref[...] = out.astype(o_ref.dtype)


def sage_conv_forward(x, adj_mask, inv_deg, wp, bp, w1, b1, w2, b2, *, mu=2.0,
                      tile_m=512, tile_k=1024, pool_tile_m=512):
    """GraphSAGE SAGEConv forward.

    x        : [N, in]  node features (f32)
    adj_mask : [N, N]   int8 0/1 neighbour mask (dense stand-in for the sparse adjacency)
    inv_deg  : [N, 1]   exact f32 inverse row degree; adj == diag(inv_deg) @ adj_mask
    wp/w1/w2 : PyTorch Linear layout (out_features, in_features); bp/b1/b2 : (1, out_features)
    """
    n, in_features = x.shape
    pool_features = wp.shape[0]
    out_features = w1.shape[0]

    # ---- tile selection ----
    tm = min(tile_m, n)
    # v7x megacore: keep >= 2 row tiles so the "parallel" row axis feeds both TensorCores.
    if n // tm < 2 and n % 2 == 0 and (n // 2) % 32 == 0:
        tm = n // 2
    tk = min(tile_k, n)
    assert n % tm == 0 and n % tk == 0, "N must divide the row/contraction tiles"
    assert tm % 32 == 0 and tk % 128 == 0, "int8 adj tiles need (32,128)-aligned shapes"
    tp = min(pool_tile_m, n)
    assert n % tp == 0

    # ---- small parameter prep (the big adj stream stays int8 — no wrapper-side cast) ----
    wp_t = wp.T.astype(jnp.bfloat16)                                  # [in, pool]
    bp_f = bp.astype(jnp.float32)
    out_pad = ((out_features + 127) // 128) * 128                     # lane-dense output slab
    w1_pad = jnp.zeros((pool_features, out_pad), jnp.bfloat16)
    w1_pad = w1_pad.at[:, :out_features].set(w1.T.astype(jnp.bfloat16))
    w2_pad = jnp.zeros((pool_features, out_pad), jnp.bfloat16)
    w2_pad = w2_pad.at[:, :out_features].set(w2.T.astype(jnp.bfloat16))
    b12 = jnp.zeros((1, out_pad), jnp.float32)
    b12 = b12.at[:, :out_features].set((b1 + b2).astype(jnp.float32))

    adj_i8 = adj_mask if adj_mask.dtype == jnp.int8 else adj_mask.astype(jnp.int8)
    inv_deg = inv_deg.astype(jnp.float32).reshape(n, 1)

    # ---- pass 1: pooled (bf16) and pooled**mu (bf16) ----
    pooled, pmu = pl.pallas_call(
        functools.partial(_pool_kernel, mu=mu),
        out_shape=(jax.ShapeDtypeStruct((n, pool_features), jnp.bfloat16),
                   jax.ShapeDtypeStruct((n, pool_features), jnp.bfloat16)),
        grid=(n // tp,),
        in_specs=[
            pl.BlockSpec((tp, in_features), lambda i: (i, 0)),
            pl.BlockSpec((in_features, pool_features), lambda i: (0, 0)),
            pl.BlockSpec((1, pool_features), lambda i: (0, 0)),
        ],
        out_specs=(pl.BlockSpec((tp, pool_features), lambda i: (i, 0)),
                   pl.BlockSpec((tp, pool_features), lambda i: (i, 0))),
        compiler_params=pltpu.CompilerParams(dimension_semantics=("parallel",)),
    )(x, wp_t, bp_f)

    # ---- pass 2: agg = (adj @ pooled**mu)**(1/mu) + fused output projection ----
    out_padded = pl.pallas_call(
        functools.partial(_agg_proj_kernel, mu=mu),
        out_shape=jax.ShapeDtypeStruct((n, out_pad), jnp.float32),
        grid=(n // tm, n // tk),
        in_specs=[
            # int8 adj-mask tile stream (the only big HBM stream), triple-buffered.
            pl.BlockSpec((tm, tk), lambda i, k: (i, k), pipeline_mode=pl.Buffered(3)),
            # pooled**mu fully VMEM-resident (constant block index -> fetched once).
            pl.BlockSpec((n, pool_features), lambda i, k: (0, 0)),
            pl.BlockSpec((tm, pool_features), lambda i, k: (i, 0)),   # pooled (bf16)
            pl.BlockSpec((tm, 1), lambda i, k: (i, 0)),               # inv_deg (f32)
            pl.BlockSpec((pool_features, out_pad), lambda i, k: (0, 0)),
            pl.BlockSpec((pool_features, out_pad), lambda i, k: (0, 0)),
            pl.BlockSpec((1, out_pad), lambda i, k: (0, 0)),
        ],
        out_specs=pl.BlockSpec((tm, out_pad), lambda i, k: (i, 0)),
        scratch_shapes=[pltpu.VMEM((tm, pool_features), jnp.float32)],
        compiler_params=pltpu.CompilerParams(
            dimension_semantics=("parallel", "arbitrary")),
    )(adj_i8, pmu, pooled, inv_deg, w1_pad, w2_pad, b12)

    # TODO(synk): for a true sparse adjacency, replace the dense int8 mask stream with a
    # PrefetchScalarGridSpec CSR row-gather (scalar-prefetched row pointers / neighbour ids
    # + manual make_async_copy gathers of pooled**mu rows) instead of densifying.
    return out_padded[:, :out_features]


def xavier_normal(key, shape, gain):
    # PyTorch nn.init.xavier_normal_ on a (fan_out, fan_in) weight.
    fan_out, fan_in = shape
    std = gain * math.sqrt(2.0 / (fan_in + fan_out))
    return std * jax.random.normal(key, shape, dtype=jnp.float32)


if __name__ == "__main__":
    key = jax.random.PRNGKey(0)
    N = 256            # number of graph nodes
    in_features = 32
    pool_features = 16
    out_features = 8
    mu = 2.0

    keys = jax.random.split(key, 8)

    # Input features and a 0/1 neighbour mask with self loops (dense sparse-adj stand-in).
    x = jax.random.normal(keys[0], (N, in_features), dtype=jnp.float32)
    mask = (jax.random.uniform(keys[1], (N, N)) < 0.1) | jnp.eye(N, dtype=bool)
    adj_mask = mask.astype(jnp.int8)
    deg = jnp.sum(mask.astype(jnp.float32), axis=1, keepdims=True)
    inv_deg = 1.0 / deg                                  # exact f32 row normalization

    gain = math.sqrt(2.0)  # calculate_gain('relu')

    # Parameters (PyTorch Linear weight shape is (out, in)); deterministic init.
    wp = xavier_normal(keys[2], (pool_features, in_features), gain)
    w1 = xavier_normal(keys[3], (out_features, pool_features), gain)
    w2 = xavier_normal(keys[4], (out_features, pool_features), gain)
    bp = (jax.random.uniform(keys[5], (1, pool_features), minval=-1, maxval=1)
          / math.sqrt(in_features)).astype(jnp.float32)
    b1 = (jax.random.uniform(keys[6], (1, out_features), minval=-1, maxval=1)
          / math.sqrt(pool_features)).astype(jnp.float32)
    b2 = (jax.random.uniform(keys[7], (1, out_features), minval=-1, maxval=1)
          / math.sqrt(pool_features)).astype(jnp.float32)

    out = sage_conv_forward(x, adj_mask, inv_deg, wp, bp, w1, b1, w2, b2, mu=mu)
    out = jax.block_until_ready(out)

    # Pure-JAX f32 reference (kernel uses bf16 x / pooled / pooled**mu -> loose tolerance).
    adj = adj_mask.astype(jnp.float32) * inv_deg         # row-normalized adjacency
    pooled_ref = jnp.maximum(x @ wp.T + bp, 0.0)
    agg_ref = (adj @ (pooled_ref ** mu)) ** (1.0 / mu)
    ref = (pooled_ref @ w1.T + b1) + (agg_ref @ w2.T + b2)
    assert out.shape == ref.shape
    assert jnp.allclose(out, ref, atol=5e-2, rtol=5e-2), "mismatch vs reference"

    print("KERNEL_OK")
</pallas_src>

<mosaic_0001>
module attributes {stable_mosaic.version = 11 : i64} {
  func.func @_pool_kernel(%arg0: i32, %arg1: memref<256x32xf32, #tpu.memory_space<vmem>>, %arg2: memref<32x16xbf16, #tpu.memory_space<vmem>>, %arg3: memref<1x16xf32, #tpu.memory_space<vmem>>, %arg4: memref<256x16xbf16, #tpu.memory_space<vmem>>, %arg5: memref<256x16xbf16, #tpu.memory_space<vmem>>) attributes {dimension_semantics = [#tpu.dimension_semantics<parallel>], iteration_bounds = array<i64: 1>, scalar_prefetch = 0 : i64, scratch_operands = 0 : i64, tpu.core_type = #tpu.core_type<tc>, window_params = [{transform_indices = @transform_0, window_bounds = array<i64: 256, 32>}, {pipeline_mode = #tpu.pipeline_mode<synchronous>, transform_indices = @transform_1, window_bounds = array<i64: 32, 16>}, {pipeline_mode = #tpu.pipeline_mode<synchronous>, transform_indices = @transform_2, window_bounds = array<i64: 1, 16>}, {transform_indices = @transform_3, window_bounds = array<i64: 256, 16>}, {transform_indices = @transform_4, window_bounds = array<i64: 256, 16>}]} {
    %c0 = arith.constant 0 : index
    %c0_0 = arith.constant 0 : index
    %0 = vector.load %arg1[%c0, %c0_0] : memref<256x32xf32, #tpu.memory_space<vmem>>, vector<256x32xf32>
    %1 = arith.truncf %0 : vector<256x32xf32> to vector<256x32xbf16>
    %c0_1 = arith.constant 0 : index
    %c0_2 = arith.constant 0 : index
    %2 = vector.load %arg2[%c0_1, %c0_2] : memref<32x16xbf16, #tpu.memory_space<vmem>>, vector<32x16xbf16>
    %cst = arith.constant dense<0.000000e+00> : vector<256x16xf32>
    %3 = tpu.matmul %1, %2, %cst {dimension_numbers = #tpu.dot_dimension_numbers<[1], [0], [0], [1], [0, 0, 1, 1], [], []>} : vector<256x32xbf16>, vector<32x16xbf16>, vector<256x16xf32> -> vector<256x16xf32>
    %c0_3 = arith.constant 0 : index
    %c0_4 = arith.constant 0 : index
    %4 = vector.load %arg3[%c0_3, %c0_4] : memref<1x16xf32, #tpu.memory_space<vmem>>, vector<1x16xf32>
    %5 = vector.broadcast %4 : vector<1x16xf32> to vector<256x16xf32>
    %6 = arith.addf %3, %5 : vector<256x16xf32>
    %cst_5 = arith.constant 0.000000e+00 : f32
    %7 = vector.broadcast %cst_5 : f32 to vector<256x16xf32>
    %8 = arith.maximumf %6, %7 : vector<256x16xf32>
    %9 = arith.mulf %8, %8 : vector<256x16xf32>
    %10 = arith.truncf %8 : vector<256x16xf32> to vector<256x16xbf16>
    %c0_6 = arith.constant 0 : index
    %c0_7 = arith.constant 0 : index
    %11 = vector.load %arg4[%c0_6, %c0_7] : memref<256x16xbf16, #tpu.memory_space<vmem>>, vector<256x16xbf16>
    tpu.vector_store %arg4[%c0_6, %c0_7], %10 {strides = array<i32>} : memref<256x16xbf16, #tpu.memory_space<vmem>>, vector<256x16xbf16>,
    %12 = arith.truncf %9 : vector<256x16xf32> to vector<256x16xbf16>
    %c0_8 = arith.constant 0 : index
    %c0_9 = arith.constant 0 : index
    %13 = vector.load %arg5[%c0_8, %c0_9] : memref<256x16xbf16, #tpu.memory_space<vmem>>, vector<256x16xbf16>
    tpu.vector_store %arg5[%c0_8, %c0_9], %12 {strides = array<i32>} : memref<256x16xbf16, #tpu.memory_space<vmem>>, vector<256x16xbf16>,
    return
  }
  func.func @transform_0(%arg0: i32) -> (i32, i32) {
    %c0_i32 = arith.constant 0 : i32
    %c0_i32_0 = arith.constant 0 : i32
    return %arg0, %c0_i32 : i32, i32
  }
  func.func @transform_1(%arg0: i32) -> (i32, i32) {
    %c0_i32 = arith.constant 0 : i32
    %c0_i32_0 = arith.constant 0 : i32
    %c0_i32_1 = arith.constant 0 : i32
    return %c0_i32, %c0_i32_0 : i32, i32
  }
  func.func @transform_2(%arg0: i32) -> (i32, i32) {
    %c0_i32 = arith.constant 0 : i32
    %c0_i32_0 = arith.constant 0 : i32
    %c0_i32_1 = arith.constant 0 : i32
    return %c0_i32, %c0_i32_0 : i32, i32
  }
  func.func @transform_3(%arg0: i32) -> (i32, i32) {
    %c0_i32 = arith.constant 0 : i32
    %c0_i32_0 = arith.constant 0 : i32
    return %arg0, %c0_i32 : i32, i32
  }
  func.func @transform_4(%arg0: i32) -> (i32, i32) {
    %c0_i32 = arith.constant 0 : i32
    %c0_i32_0 = arith.constant 0 : i32
    return %arg0, %c0_i32 : i32, i32
  }
}

</mosaic_0001>

<bundles_post_ra>
// kernel: tpu_custom_call.1
= control target key start
LH: loop header
LB: loop body
LE: loop exit
PB: predicated region body
PF: predicated region fallthrough
CT: control target
= control target key end

     0   :  { %vm88_vm0 = vcmask 261120   ;;  %vm490_vm1 = vcmask 125952   ;;  %s1334_s1 = inlined_call_operand.vmem [shape: bf16[32,16], index: 1, kind: input, shape index: {}]   ;;  %s1335_s0 = inlined_call_operand.vmem [shape: f32[256,32], index: 0, kind: input, shape index: {}]   ;;  %s1336_s2 = inlined_call_operand.vmem [shape: f32[1,16], index: 2, kind: input, shape index: {}]   ;;  %s1337_s3 = inlined_call_operand.vmem [shape: bf16[256,16], index: 3, kind: output, shape index: {0}]   ;;  %s1338_s4 = inlined_call_operand.vmem [shape: bf16[256,16], index: 4, kind: output, shape index: {1}]  }
   0x1   :  { %v896_v0 = vld [vmem:[%s1334_s1] sm:$0xff]   ;;  %v897_v1 = vld [vmem:[%s1334_s1 + $0x8] sm:$0xff]   ;;  %v19_v7 = vld [vmem:[%s1335_s0 + $0x10] sm:$0xff] }
   0x2   :  { %856 = vmatprep.subr.bf16.mxu0 %v896_v0  ;;  %892 = vmatprep.subr.bf16.mxu1 %v896_v0  ;;  %v17_v2 = vld [vmem:[%s1335_s0] sm:$0xff]  ;;  %v18_v3 = vld [vmem:[%s1335_s0 + $0x8] sm:$0xff]  ;;  %v20_v8 = vld [vmem:[%s1335_s0 + $0x18] sm:$0xff] }
   0x3   :  { %v33_v4 = vld [vmem:[%s1335_s0 + $0x80] sm:$0xff]  ;;  %857 = vmatpush3.bf16.msra.mxu0 %v896_v0  ;;  %894 = vmatpush3.bf16.msra.mxu1 %v896_v0  ;;  %v49_v5 = vpack.c.bf16 %v18_v3, %v17_v2  ;;  %v34_v6 = vld [vmem:[%s1335_s0 + $0x88] sm:$0xff]  ;;  %v35_v10 = vld [vmem:[%s1335_s0 + $0x90] sm:$0xff]  ;;  %v50_v16 = vpack.c.bf16 %v20_v8, %v19_v7 }
   0x4   :  { %858 = vmatprep.subr.bf16.mxu0 %v897_v1  ;;  %893 = vmatprep.subr.bf16.mxu1 %v897_v1  ;;  %v57_v9 = vpack.c.bf16 %v34_v6, %v33_v4  ;;  %v36_v11 = vld [vmem:[%s1335_s0 + $0x98] sm:$0xff]  ;;  %v21_v12 = vld [vmem:[%s1335_s0 + $0x20] sm:$0xff]  ;;  %v22_v13 = vld [vmem:[%s1335_s0 + $0x28] sm:$0xff] }
   0x5   :  { %860 = vmatprep.mubr.msk.bf16.mxu0 %vm88_vm0, %v49_v5  ;;  %v37_v14 = vld [vmem:[%s1335_s0 + $0xa0] sm:$0xff]  ;;  %v38_v15 = vld [vmem:[%s1335_s0 + $0xa8] sm:$0xff]  ;;  %v58_v17 = vpack.c.bf16 %v36_v11, %v35_v10  ;;  %v51_v18 = vpack.c.bf16 %v22_v13, %v21_v12  ;;  %v23_v20 = vld [vmem:[%s1335_s0 + $0x30] sm:$0xff] }
   0x6   :  { %876 = vmatprep.mubr.msk.bf16.mxu1 %vm88_vm0, %v57_v9  ;;  %v59_v19 = vpack.c.bf16 %v38_v15, %v37_v14  ;;  %v24_v21 = vld [vmem:[%s1335_s0 + $0x38] sm:$0xff]  ;;  %v39_v22 = vld [vmem:[%s1335_s0 + $0xb0] sm:$0xff]  ;;  %v25_v24 = vld [vmem:[%s1335_s0 + $0x40] sm:$0xff] }
   0x7   :  { %859 = vmatpush3.bf16.msra.mxu0 %v897_v1  ;;  %895 = vmatpush3.bf16.msra.mxu1 %v897_v1  ;;  %v40_v23 = vld [vmem:[%s1335_s0 + $0xb8] sm:$0xff]  ;;  %v26_v25 = vld [vmem:[%s1335_s0 + $0x48] sm:$0xff]  ;;  %v41_v26 = vld [vmem:[%s1335_s0 + $0xc0] sm:$0xff]  ;;  %v52_v28 = vpack.c.bf16 %v24_v21, %v23_v20 }
   0x8   :  { %v42_v27 = vld [vmem:[%s1335_s0 + $0xc8] sm:$0xff]  ;;  %v60_v29 = vpack.c.bf16 %v40_v23, %v39_v22  ;;  %v53_v30 = vpack.c.bf16 %v26_v25, %v25_v24  ;;  %v27_v32 = vld [vmem:[%s1335_s0 + $0x50] sm:$0xff]  ;;  %v28_v33 = vld [vmem:[%s1335_s0 + $0x58] sm:$0xff] }
   0x9   :  { %v61_v31 = vpack.c.bf16 %v42_v27, %v41_v26  ;;  %v43_v34 = vld [vmem:[%s1335_s0 + $0xd0] sm:$0xff]  ;;  %v44_v35 = vld [vmem:[%s1335_s0 + $0xd8] sm:$0xff]  ;;  %v29_v36 = vld [vmem:[%s1335_s0 + $0x60] sm:$0xff]  ;;  %v54_v40 = vpack.c.bf16 %v28_v33, %v27_v32 }
   0xa   :  { %861 = vmatmul.mubr.msk.bf16.vlgmr.msra.gmra.mrb[0].mxu0 %vm88_vm0, %v50_v16  ;;  %877 = vmatmul.mubr.msk.bf16.vlgmr.msra.gmra.mrb[0].mxu1 %vm88_vm0, %v58_v17  ;;  %v30_v37 = vld [vmem:[%s1335_s0 + $0x68] sm:$0xff]  ;;  %v45_v38 = vld [vmem:[%s1335_s0 + $0xe0] sm:$0xff]  ;;  %v62_v41 = vpack.c.bf16 %v44_v35, %v43_v34  ;;  %v31_v44 = vld [vmem:[%s1335_s0 + $0x70] sm:$0xff] }
   0xb   :  { %864 = vmatprep.mubr.msk.bf16.mxu0 %vm88_vm0, %v51_v18  ;;  %880 = vmatprep.mubr.msk.bf16.mxu1 %vm88_vm0, %v59_v19  ;;  %v46_v39 = vld [vmem:[%s1335_s0 + $0xe8] sm:$0xff]  ;;  %v55_v42 = vpack.c.bf16 %v30_v37, %v29_v36  ;;  %v32_v45 = vld [vmem:[%s1335_s0 + $0x78] sm:$0xff]  ;;  %v47_v46 = vld [vmem:[%s1335_s0 + $0xf0] sm:$0xff] }
   0xc   :  { %v63_v43 = vpack.c.bf16 %v46_v39, %v45_v38  ;;  %v48_v47 = vld [vmem:[%s1335_s0 + $0xf8] sm:$0xff]  ;;  %v56_v48 = vpack.c.bf16 %v32_v45, %v31_v44  ;;  %v1044_v50 = vld [vmem:[%s1336_s2] ss:$0 sm:$0xff] }
   0xd   :  { %v64_v49 = vpack.c.bf16 %v48_v47, %v47_v46 }
  0x12   :  { %865 = vmatmul.mubr.msk.bf16.gmra.mrb[4].mxu0 %vm88_vm0, %v52_v28  ;;  %881 = vmatmul.mubr.msk.bf16.gmra.mrb[4].mxu1 %vm88_vm0, %v60_v29 }
  0x13   :  { %868 = vmatprep.mubr.msk.bf16.mxu0 %vm88_vm0, %v53_v30  ;;  %884 = vmatprep.mubr.msk.bf16.mxu1 %vm88_vm0, %v61_v31 }
  0x1a   :  { %869 = vmatmul.mubr.msk.bf16.gmra.mrb[8].mxu0 %vm88_vm0, %v54_v40  ;;  %885 = vmatmul.mubr.msk.bf16.gmra.mrb[8].mxu1 %vm88_vm0, %v62_v41 }
  0x1b   :  { %872 = vmatprep.mubr.msk.bf16.mxu0 %vm88_vm0, %v55_v42  ;;  %888 = vmatprep.mubr.msk.bf16.mxu1 %vm88_vm0, %v63_v43 }
  0x22   :  { %873 = vmatmul.mubr.msk.bf16.gmra.mrb[12].mxu0 %vm88_vm0, %v56_v48  ;;  %889 = vmatmul.mubr.msk.bf16.gmra.mrb[12].mxu1 %vm88_vm0, %v64_v49 }
  0xdd   :  { %v862_v51 = vpop.f32.mrb[0].mxu0  ;;  %v878_v52 = vpop.f32.mrb[0].mxu1 }
  0xde   :  { %v180_v53 = vadd.f32 %v862_v51, %v1044_v50  ;;  %v244_v54 = vadd.f32 %v878_v52, %v1044_v50  ;;  %v171_v55 = vpop.f32.mrb[1].mxu0  ;;  %v235_v56 = vpop.f32.mrb[1].mxu1 }
  0xdf   :  { %v172_v57 = vadd.f32 %v1044_v50, %v171_v55  ;;  %v236_v58 = vadd.f32 %v1044_v50, %v235_v56  ;;  %v863_v59 = vpop.f32.mrb[2].mxu0  ;;  %v879_v60 = vpop.f32.mrb[2].mxu1 }
  0xe0   :  { %v300_v61 = vmax.f32 %v180_v53, 0.0  ;;  %v316_v62 = vmax.f32 %v244_v54, 0.0  ;;  %v183_v63 = vadd.f32 %v863_v59, %v1044_v50  ;;  %v247_v0 = vadd.f32 %v879_v60, %v1044_v50  ;;  %v174_v1 = vpop.f32.mrb[3].mxu0  ;;  %v238_v2 = vpop.f32.mrb[3].mxu1 }
  0xe1   :  { %v298_v3 = vmax.f32 %v172_v57, 0.0  ;;  %v314_v4 = vmax.f32 %v236_v58, 0.0  ;;  %v175_v5 = vadd.f32 %v1044_v50, %v174_v1  ;;  %v239_v6 = vadd.f32 %v1044_v50, %v238_v2 }
  0xe2   :  { %v332_v7 = vmul.f32 %v300_v61, %v300_v61  ;;  %v776_v8 = vpack.c.bf16 %v300_v61, %v300_v61  ;;  %v348_v9 = vmul.f32 %v316_v62, %v316_v62  ;;  %v792_v10 = vpack.c.bf16 %v316_v62, %v316_v62 }
  0xe3   :  { %v330_v11 = vmul.f32 %v298_v3, %v298_v3  ;;  %v774_v12 = vpack.c.bf16 %v298_v3, %v298_v3  ;;  %v346_v13 = vmul.f32 %v314_v4, %v314_v4  ;;  %v790_v14 = vpack.c.bf16 %v314_v4, %v314_v4 }
  0xe4   :  { %493 = vst.msk [vmem:[%s1337_s3 + $0x8] sm:$0xf] %vm490_vm1, %v776_v8  ;;  %v808_v15 = vpack.c.bf16 %v332_v7, %v332_v7  ;;  %509 = vst.msk [vmem:[%s1337_s3 + $0x48] sm:$0xf] %vm490_vm1, %v792_v10  ;;  %v824_v16 = vpack.c.bf16 %v348_v9, %v348_v9  ;;  %v301_v17 = vmax.f32 %v183_v63, 0.0  ;;  %v317_v18 = vmax.f32 %v247_v0, 0.0 }
  0xe5   :  { %491 = vst.msk [vmem:[%s1337_s3] sm:$0xf] %vm490_vm1, %v774_v12  ;;  %v806_v19 = vpack.c.bf16 %v330_v11, %v330_v11  ;;  %507 = vst.msk [vmem:[%s1337_s3 + $0x40] sm:$0xf] %vm490_vm1, %v790_v14  ;;  %v822_v20 = vpack.c.bf16 %v346_v13, %v346_v13  ;;  %v299_v21 = vmax.f32 %v175_v5, 0.0  ;;  %v315_v22 = vmax.f32 %v239_v6, 0.0 }
  0xe6   :  { %v866_v23 = vpop.f32.mrb[4].mxu0  ;;  %v882_v24 = vpop.f32.mrb[4].mxu1  ;;  %653 = vst.msk [vmem:[%s1338_s4 + $0x8] sm:$0xf] %vm490_vm1, %v808_v15  ;;  %669 = vst.msk [vmem:[%s1338_s4 + $0x48] sm:$0xf] %vm490_vm1, %v824_v16  ;;  %v333_v25 = vmul.f32 %v301_v17, %v301_v17  ;;  %v777_v26 = vpack.c.bf16 %v301_v17, %v301_v17  ;;  %v349_v27 = vmul.f32 %v317_v18, %v317_v18 }
  0xe7   :  { %v793_v28 = vpack.c.bf16 %v317_v18, %v317_v18  ;;  %v187_v29 = vpop.f32.mrb[5].mxu0  ;;  %v251_v30 = vpop.f32.mrb[5].mxu1  ;;  %651 = vst.msk [vmem:[%s1338_s4] sm:$0xf] %vm490_vm1, %v806_v19  ;;  %667 = vst.msk [vmem:[%s1338_s4 + $0x40] sm:$0xf] %vm490_vm1, %v822_v20  ;;  %v331_v31 = vmul.f32 %v299_v21, %v299_v21  ;;  %v775_v32 = vpack.c.bf16 %v299_v21, %v299_v21 }
  0xe8   :  { %v347_v33 = vmul.f32 %v315_v22, %v315_v22  ;;  %v791_v34 = vpack.c.bf16 %v315_v22, %v315_v22  ;;  %v867_v35 = vpop.f32.mrb[6].mxu0  ;;  %v883_v36 = vpop.f32.mrb[6].mxu1  ;;  %494 = vst.msk [vmem:[%s1337_s3 + $0xc] sm:$0xf] %vm490_vm1, %v777_v26  ;;  %v809_v37 = vpack.c.bf16 %v333_v25, %v333_v25  ;;  %v825_v38 = vpack.c.bf16 %v349_v27, %v349_v27 }
  0xe9   :  { %510 = vst.msk [vmem:[%s1337_s3 + $0x4c] sm:$0xf] %vm490_vm1, %v793_v28  ;;  %v196_v39 = vadd.f32 %v866_v23, %v1044_v50  ;;  %v260_v40 = vadd.f32 %v882_v24, %v1044_v50  ;;  %v190_v41 = vpop.f32.mrb[7].mxu0  ;;  %v254_v42 = vpop.f32.mrb[7].mxu1  ;;  %492 = vst.msk [vmem:[%s1337_s3 + $0x4] sm:$0xf] %vm490_vm1, %v775_v32  ;;  %v807_v43 = vpack.c.bf16 %v331_v31, %v331_v31 }
  0xea   :  { %508 = vst.msk [vmem:[%s1337_s3 + $0x44] sm:$0xf] %vm490_vm1, %v791_v34  ;;  %v823_v44 = vpack.c.bf16 %v347_v33, %v347_v33  ;;  %v188_v45 = vadd.f32 %v1044_v50, %v187_v29  ;;  %v252_v46 = vadd.f32 %v1044_v50, %v251_v30  ;;  %654 = vst.msk [vmem:[%s1338_s4 + $0xc] sm:$0xf] %vm490_vm1, %v809_v37 }
  0xeb   :  { %670 = vst.msk [vmem:[%s1338_s4 + $0x4c] sm:$0xf] %vm490_vm1, %v825_v38  ;;  %v304_v47 = vmax.f32 %v196_v39, 0.0  ;;  %v320_v48 = vmax.f32 %v260_v40, 0.0  ;;  %v199_v49 = vadd.f32 %v867_v35, %v1044_v50  ;;  %v263_v51 = vadd.f32 %v883_v36, %v1044_v50  ;;  %652 = vst.msk [vmem:[%s1338_s4 + $0x4] sm:$0xf] %vm490_vm1, %v807_v43 }
  0xec   :  { %668 = vst.msk [vmem:[%s1338_s4 + $0x44] sm:$0xf] %vm490_vm1, %v823_v44  ;;  %v302_v52 = vmax.f32 %v188_v45, 0.0  ;;  %v318_v53 = vmax.f32 %v252_v46, 0.0  ;;  %v191_v54 = vadd.f32 %v1044_v50, %v190_v41  ;;  %v255_v55 = vadd.f32 %v1044_v50, %v254_v42 }
  0xed   :  { %v336_v56 = vmul.f32 %v304_v47, %v304_v47  ;;  %v780_v57 = vpack.c.bf16 %v304_v47, %v304_v47  ;;  %v352_v58 = vmul.f32 %v320_v48, %v320_v48  ;;  %v796_v59 = vpack.c.bf16 %v320_v48, %v320_v48  ;;  %v870_v0 = vpop.f32.mrb[8].mxu0  ;;  %v886_v1 = vpop.f32.mrb[8].mxu1 }
  0xee   :  { %v334_v60 = vmul.f32 %v302_v52, %v302_v52  ;;  %v778_v61 = vpack.c.bf16 %v302_v52, %v302_v52  ;;  %v350_v62 = vmul.f32 %v318_v53, %v318_v53  ;;  %v794_v63 = vpack.c.bf16 %v318_v53, %v318_v53  ;;  %v203_v6 = vpop.f32.mrb[9].mxu0  ;;  %v267_v7 = vpop.f32.mrb[9].mxu1 }
  0xef   :  { %497 = vst.msk [vmem:[%s1337_s3 + $0x18] sm:$0xf] %vm490_vm1, %v780_v57  ;;  %v812_v2 = vpack.c.bf16 %v336_v56, %v336_v56  ;;  %513 = vst.msk [vmem:[%s1337_s3 + $0x58] sm:$0xf] %vm490_vm1, %v796_v59  ;;  %v828_v3 = vpack.c.bf16 %v352_v58, %v352_v58  ;;  %v305_v4 = vmax.f32 %v199_v49, 0.0  ;;  %v321_v5 = vmax.f32 %v263_v51, 0.0 }
  0xf0   :  { %495 = vst.msk [vmem:[%s1337_s3 + $0x10] sm:$0xf] %vm490_vm1, %v778_v61  ;;  %v810_v8 = vpack.c.bf16 %v334_v60, %v334_v60  ;;  %511 = vst.msk [vmem:[%s1337_s3 + $0x50] sm:$0xf] %vm490_vm1, %v794_v63  ;;  %v826_v9 = vpack.c.bf16 %v350_v62, %v350_v62  ;;  %v303_v10 = vmax.f32 %v191_v54, 0.0  ;;  %v319_v11 = vmax.f32 %v255_v55, 0.0 }
  0xf1   :  { %v871_v12 = vpop.f32.mrb[10].mxu0  ;;  %v887_v13 = vpop.f32.mrb[10].mxu1  ;;  %657 = vst.msk [vmem:[%s1338_s4 + $0x18] sm:$0xf] %vm490_vm1, %v812_v2  ;;  %673 = vst.msk [vmem:[%s1338_s4 + $0x58] sm:$0xf] %vm490_vm1, %v828_v3  ;;  %v337_v14 = vmul.f32 %v305_v4, %v305_v4  ;;  %v781_v15 = vpack.c.bf16 %v305_v4, %v305_v4  ;;  %v353_v16 = vmul.f32 %v321_v5, %v321_v5 }
  0xf2   :  { %v797_v17 = vpack.c.bf16 %v321_v5, %v321_v5  ;;  %v206_v18 = vpop.f32.mrb[11].mxu0  ;;  %v270_v19 = vpop.f32.mrb[11].mxu1  ;;  %655 = vst.msk [vmem:[%s1338_s4 + $0x10] sm:$0xf] %vm490_vm1, %v810_v8  ;;  %671 = vst.msk [vmem:[%s1338_s4 + $0x50] sm:$0xf] %vm490_vm1, %v826_v9  ;;  %v335_v20 = vmul.f32 %v303_v10, %v303_v10  ;;  %v779_v21 = vpack.c.bf16 %v303_v10, %v303_v10 }
  0xf3   :  { %v351_v22 = vmul.f32 %v319_v11, %v319_v11  ;;  %v795_v23 = vpack.c.bf16 %v319_v11, %v319_v11  ;;  %498 = vst.msk [vmem:[%s1337_s3 + $0x1c] sm:$0xf] %vm490_vm1, %v781_v15  ;;  %v813_v24 = vpack.c.bf16 %v337_v14, %v337_v14  ;;  %v829_v25 = vpack.c.bf16 %v353_v16, %v353_v16 }
  0xf4   :  { %514 = vst.msk [vmem:[%s1337_s3 + $0x5c] sm:$0xf] %vm490_vm1, %v797_v17  ;;  %v212_v26 = vadd.f32 %v870_v0, %v1044_v50  ;;  %v276_v27 = vadd.f32 %v886_v1, %v1044_v50  ;;  %496 = vst.msk [vmem:[%s1337_s3 + $0x14] sm:$0xf] %vm490_vm1, %v779_v21  ;;  %v811_v28 = vpack.c.bf16 %v335_v20, %v335_v20 }
  0xf5   :  { %512 = vst.msk [vmem:[%s1337_s3 + $0x54] sm:$0xf] %vm490_vm1, %v795_v23  ;;  %v827_v29 = vpack.c.bf16 %v351_v22, %v351_v22  ;;  %v204_v30 = vadd.f32 %v1044_v50, %v203_v6  ;;  %v268_v31 = vadd.f32 %v1044_v50, %v267_v7  ;;  %658 = vst.msk [vmem:[%s1338_s4 + $0x1c] sm:$0xf] %vm490_vm1, %v813_v24  ;;  %v874_v40 = vpop.f32.mrb[12].mxu0  ;;  %v890_v41 = vpop.f32.mrb[12].mxu1 }
  0xf6   :  { %674 = vst.msk [vmem:[%s1338_s4 + $0x5c] sm:$0xf] %vm490_vm1, %v829_v25  ;;  %v308_v32 = vmax.f32 %v212_v26, 0.0  ;;  %v324_v33 = vmax.f32 %v276_v27, 0.0  ;;  %v215_v34 = vadd.f32 %v871_v12, %v1044_v50  ;;  %v279_v35 = vadd.f32 %v887_v13, %v1044_v50  ;;  %656 = vst.msk [vmem:[%s1338_s4 + $0x14] sm:$0xf] %vm490_vm1, %v811_v28 }
  0xf7   :  { %672 = vst.msk [vmem:[%s1338_s4 + $0x54] sm:$0xf] %vm490_vm1, %v827_v29  ;;  %v306_v36 = vmax.f32 %v204_v30, 0.0  ;;  %v322_v37 = vmax.f32 %v268_v31, 0.0  ;;  %v207_v38 = vadd.f32 %v1044_v50, %v206_v18  ;;  %v271_v39 = vadd.f32 %v1044_v50, %v270_v19  ;;  %v219_v46 = vpop.f32.mrb[13].mxu0  ;;  %v283_v47 = vpop.f32.mrb[13].mxu1 }
  0xf8   :  { %v340_v42 = vmul.f32 %v308_v32, %v308_v32  ;;  %v784_v43 = vpack.c.bf16 %v308_v32, %v308_v32  ;;  %v356_v44 = vmul.f32 %v324_v33, %v324_v33  ;;  %v800_v45 = vpack.c.bf16 %v324_v33, %v324_v33  ;;  %v875_v53 = vpop.f32.mrb[14].mxu0  ;;  %v891_v54 = vpop.f32.mrb[14].mxu1 }
  0xf9   :  { %v338_v48 = vmul.f32 %v306_v36, %v306_v36  ;;  %v782_v49 = vpack.c.bf16 %v306_v36, %v306_v36  ;;  %v354_v51 = vmul.f32 %v322_v37, %v322_v37  ;;  %v798_v52 = vpack.c.bf16 %v322_v37, %v322_v37  ;;  %v222_v59 = vpop.f32.mrb[15].mxu0  ;;  %v286_v60 = vpop.f32.mrb[15].mxu1 }
  0xfa   :  { %501 = vst.msk [vmem:[%s1337_s3 + $0x28] sm:$0xf] %vm490_vm1, %v784_v43  ;;  %v816_v55 = vpack.c.bf16 %v340_v42, %v340_v42  ;;  %517 = vst.msk [vmem:[%s1337_s3 + $0x68] sm:$0xf] %vm490_vm1, %v800_v45  ;;  %v832_v56 = vpack.c.bf16 %v356_v44, %v356_v44  ;;  %v309_v57 = vmax.f32 %v215_v34, 0.0  ;;  %v325_v58 = vmax.f32 %v279_v35, 0.0 }
  0xfb   :  { %499 = vst.msk [vmem:[%s1337_s3 + $0x20] sm:$0xf] %vm490_vm1, %v782_v49  ;;  %v814_v61 = vpack.c.bf16 %v338_v48, %v338_v48  ;;  %515 = vst.msk [vmem:[%s1337_s3 + $0x60] sm:$0xf] %vm490_vm1, %v798_v52  ;;  %v830_v62 = vpack.c.bf16 %v354_v51, %v354_v51  ;;  %v307_v63 = vmax.f32 %v207_v38, 0.0  ;;  %v323_v0 = vmax.f32 %v271_v39, 0.0 }
  0xfc   :  { %661 = vst.msk [vmem:[%s1338_s4 + $0x28] sm:$0xf] %vm490_vm1, %v816_v55  ;;  %677 = vst.msk [vmem:[%s1338_s4 + $0x68] sm:$0xf] %vm490_vm1, %v832_v56  ;;  %v341_v1 = vmul.f32 %v309_v57, %v309_v57  ;;  %v785_v2 = vpack.c.bf16 %v309_v57, %v309_v57  ;;  %v357_v3 = vmul.f32 %v325_v58, %v325_v58 }
  0xfd   :  { %v801_v4 = vpack.c.bf16 %v325_v58, %v325_v58  ;;  %659 = vst.msk [vmem:[%s1338_s4 + $0x20] sm:$0xf] %vm490_vm1, %v814_v61  ;;  %675 = vst.msk [vmem:[%s1338_s4 + $0x60] sm:$0xf] %vm490_vm1, %v830_v62  ;;  %v339_v5 = vmul.f32 %v307_v63, %v307_v63  ;;  %v783_v6 = vpack.c.bf16 %v307_v63, %v307_v63 }
  0xfe   :  { %v355_v7 = vmul.f32 %v323_v0, %v323_v0  ;;  %v799_v8 = vpack.c.bf16 %v323_v0, %v323_v0  ;;  %502 = vst.msk [vmem:[%s1337_s3 + $0x2c] sm:$0xf] %vm490_vm1, %v785_v2  ;;  %v817_v9 = vpack.c.bf16 %v341_v1, %v341_v1  ;;  %v833_v10 = vpack.c.bf16 %v357_v3, %v357_v3 }
  0xff   :  { %518 = vst.msk [vmem:[%s1337_s3 + $0x6c] sm:$0xf] %vm490_vm1, %v801_v4  ;;  %v228_v11 = vadd.f32 %v874_v40, %v1044_v50  ;;  %v292_v12 = vadd.f32 %v890_v41, %v1044_v50  ;;  %500 = vst.msk [vmem:[%s1337_s3 + $0x24] sm:$0xf] %vm490_vm1, %v783_v6  ;;  %v815_v13 = vpack.c.bf16 %v339_v5, %v339_v5 }
 0x100   :  { %516 = vst.msk [vmem:[%s1337_s3 + $0x64] sm:$0xf] %vm490_vm1, %v799_v8  ;;  %v831_v14 = vpack.c.bf16 %v355_v7, %v355_v7  ;;  %v220_v15 = vadd.f32 %v1044_v50, %v219_v46  ;;  %v284_v16 = vadd.f32 %v1044_v50, %v283_v47  ;;  %662 = vst.msk [vmem:[%s1338_s4 + $0x2c] sm:$0xf] %vm490_vm1, %v817_v9 }
 0x101   :  { %678 = vst.msk [vmem:[%s1338_s4 + $0x6c] sm:$0xf] %vm490_vm1, %v833_v10  ;;  %v312_v17 = vmax.f32 %v228_v11, 0.0  ;;  %v328_v18 = vmax.f32 %v292_v12, 0.0  ;;  %v231_v19 = vadd.f32 %v875_v53, %v1044_v50  ;;  %v295_v20 = vadd.f32 %v891_v54, %v1044_v50  ;;  %660 = vst.msk [vmem:[%s1338_s4 + $0x24] sm:$0xf] %vm490_vm1, %v815_v13 }
 0x102   :  { %676 = vst.msk [vmem:[%s1338_s4 + $0x64] sm:$0xf] %vm490_vm1, %v831_v14  ;;  %v310_v21 = vmax.f32 %v220_v15, 0.0  ;;  %v326_v22 = vmax.f32 %v284_v16, 0.0  ;;  %v223_v23 = vadd.f32 %v1044_v50, %v222_v59  ;;  %v287_v24 = vadd.f32 %v1044_v50, %v286_v60 }
 0x103   :  { %v344_v25 = vmul.f32 %v312_v17, %v312_v17  ;;  %v788_v26 = vpack.c.bf16 %v312_v17, %v312_v17  ;;  %v360_v27 = vmul.f32 %v328_v18, %v328_v18  ;;  %v804_v28 = vpack.c.bf16 %v328_v18, %v328_v18 }
 0x104   :  { %v342_v29 = vmul.f32 %v310_v21, %v310_v21  ;;  %v786_v30 = vpack.c.bf16 %v310_v21, %v310_v21  ;;  %v358_v31 = vmul.f32 %v326_v22, %v326_v22  ;;  %v802_v32 = vpack.c.bf16 %v326_v22, %v326_v22 }
 0x105   :  { %505 = vst.msk [vmem:[%s1337_s3 + $0x38] sm:$0xf] %vm490_vm1, %v788_v26  ;;  %v820_v33 = vpack.c.bf16 %v344_v25, %v344_v25  ;;  %521 = vst.msk [vmem:[%s1337_s3 + $0x78] sm:$0xf] %vm490_vm1, %v804_v28  ;;  %v836_v50 = vpack.c.bf16 %v360_v27, %v360_v27  ;;  %v313_v34 = vmax.f32 %v231_v19, 0.0  ;;  %v329_v35 = vmax.f32 %v295_v20, 0.0 }
 0x106   :  { %503 = vst.msk [vmem:[%s1337_s3 + $0x30] sm:$0xf] %vm490_vm1, %v786_v30  ;;  %v818_v36 = vpack.c.bf16 %v342_v29, %v342_v29  ;;  %519 = vst.msk [vmem:[%s1337_s3 + $0x70] sm:$0xf] %vm490_vm1, %v802_v32  ;;  %v834_v37 = vpack.c.bf16 %v358_v31, %v358_v31  ;;  %v311_v38 = vmax.f32 %v223_v23, 0.0  ;;  %v327_v39 = vmax.f32 %v287_v24, 0.0 }
 0x107   :  { %665 = vst.msk [vmem:[%s1338_s4 + $0x38] sm:$0xf] %vm490_vm1, %v820_v33  ;;  %681 = vst.msk [vmem:[%s1338_s4 + $0x78] sm:$0xf] %vm490_vm1, %v836_v50  ;;  %v345_v40 = vmul.f32 %v313_v34, %v313_v34  ;;  %v789_v41 = vpack.c.bf16 %v313_v34, %v313_v34  ;;  %v361_v42 = vmul.f32 %v329_v35, %v329_v35 }
 0x108   :  { %v805_v43 = vpack.c.bf16 %v329_v35, %v329_v35  ;;  %663 = vst.msk [vmem:[%s1338_s4 + $0x30] sm:$0xf] %vm490_vm1, %v818_v36  ;;  %679 = vst.msk [vmem:[%s1338_s4 + $0x70] sm:$0xf] %vm490_vm1, %v834_v37  ;;  %v343_v44 = vmul.f32 %v311_v38, %v311_v38  ;;  %v787_v45 = vpack.c.bf16 %v311_v38, %v311_v38 }
 0x109   :  { %v359_v46 = vmul.f32 %v327_v39, %v327_v39  ;;  %v803_v47 = vpack.c.bf16 %v327_v39, %v327_v39  ;;  %506 = vst.msk [vmem:[%s1337_s3 + $0x3c] sm:$0xf] %vm490_vm1, %v789_v41  ;;  %v821_v48 = vpack.c.bf16 %v345_v40, %v345_v40  ;;  %v837_v49 = vpack.c.bf16 %v361_v42, %v361_v42 }
 0x10a   :  { %522 = vst.msk [vmem:[%s1337_s3 + $0x7c] sm:$0xf] %vm490_vm1, %v805_v43  ;;  %504 = vst.msk [vmem:[%s1337_s3 + $0x34] sm:$0xf] %vm490_vm1, %v787_v45  ;;  %v819_v51 = vpack.c.bf16 %v343_v44, %v343_v44 }
 0x10b   :  { %520 = vst.msk [vmem:[%s1337_s3 + $0x74] sm:$0xf] %vm490_vm1, %v803_v47  ;;  %v835_v52 = vpack.c.bf16 %v359_v46, %v359_v46  ;;  %666 = vst.msk [vmem:[%s1338_s4 + $0x3c] sm:$0xf] %vm490_vm1, %v821_v48 }
 0x10c   :  { %682 = vst.msk [vmem:[%s1338_s4 + $0x7c] sm:$0xf] %vm490_vm1, %v837_v49  ;;  %664 = vst.msk [vmem:[%s1338_s4 + $0x34] sm:$0xf] %vm490_vm1, %v819_v51 }
 0x10d   :  { %680 = vst.msk [vmem:[%s1338_s4 + $0x74] sm:$0xf] %vm490_vm1, %v835_v52 }

</bundles_post_ra>
